<compile_context>
chip_gen: v7x
topology: tpu7x:2x2x1
jax: 0.10.0
libtpu: 0.0.40
codegen_flags: <defaults>
</compile_context>

<pallas_src>
import functools

import jax
import jax.numpy as jnp
from jax.experimental import pallas as pl
from jax.experimental.pallas import tpu as pltpu


# ---------------------------------------------------------------------------
# Hardware queries (cached; safe fallbacks if unavailable)
# ---------------------------------------------------------------------------
@functools.lru_cache(maxsize=None)
def _vmem_capacity_bytes():
    try:
        cap = int(pltpu.get_tpu_info().vmem_capacity_bytes)
        if cap > 0:
            return cap
    except Exception:
        pass
    return 64 * 1024 * 1024          # conservative (v7x per-core VMEM)


@functools.lru_cache(maxsize=None)
def _num_stats_chunks():
    """2 on multi-TensorCore parts (v7x / megacore), else 1."""
    try:
        dev = jax.devices()[0]
        nc = getattr(dev, "num_cores", None)
        if isinstance(nc, int) and nc >= 2:
            return 2
        kind = str(getattr(dev, "device_kind", "")).lower()
        if "v7" in kind:
            return 2
    except Exception:
        pass
    return 1


# ---------------------------------------------------------------------------
# Kernels
# ---------------------------------------------------------------------------
def _resident_kernel(x_ref, gamma_ref, beta_ref, o_ref, *, n, eps):
    """Whole-array-resident fallback for tiny inputs (n < 8 rows)."""
    xb = x_ref[...].astype(jnp.float32)
    inv_n = 1.0 / float(n)
    s = jnp.sum(xb, axis=0, keepdims=True)
    ss = jnp.sum(xb * xb, axis=0, keepdims=True)
    mean = s * inv_n
    var = jnp.maximum(ss * inv_n - mean * mean, 0.0)
    rstd = jax.lax.rsqrt(var + eps)
    scale = gamma_ref[...] * rstd
    bias = beta_ref[...] - mean * scale
    o_ref[...] = (xb * scale + bias).astype(o_ref.dtype)


def _fused_kernel(x_ref, gamma_ref, beta_ref, o_ref, xf_ref, acc_s_ref,
                  acc_q_ref, *, n, tile_rows, eps):
    """Fused single-call path: x streamed in row tiles (pipelined HBM reads),
    an f32 copy kept resident in VMEM, stats accumulated with plain vreg adds
    into (8, d) accumulators, normalize + resident-output write on the last
    grid step.  Total HBM traffic: 1 read + 1 write of x."""
    i = pl.program_id(0)

    @pl.when(i == 0)
    def _init():
        acc_s_ref[...] = jnp.zeros_like(acc_s_ref)
        acc_q_ref[...] = jnp.zeros_like(acc_q_ref)

    xb = x_ref[...].astype(jnp.float32)
    row0 = i * tile_rows
    rows = jax.lax.broadcasted_iota(jnp.int32, xb.shape, 0) + row0
    xb = jnp.where(rows < n, xb, 0.0)        # ragged edge-block reads -> mask

    # Keep an f32 copy resident so x is only read from HBM once.
    xf_ref[pl.ds(pl.multiple_of(row0, 8), tile_rows), :] = xb

    folded = xb.reshape(tile_rows // 8, 8, xb.shape[-1])
    acc_s_ref[...] += jnp.sum(folded, axis=0)
    acc_q_ref[...] += jnp.sum(folded * folded, axis=0)

    @pl.when(i == pl.num_programs(0) - 1)
    def _finalize():
        s = jnp.sum(acc_s_ref[...], axis=0, keepdims=True)
        ss = jnp.sum(acc_q_ref[...], axis=0, keepdims=True)
        inv_n = 1.0 / float(n)
        mean = s * inv_n
        # TODO(synk): E[x^2]-mean^2 is cancellation-prone for poorly centered
        # data; a shifted/compensated accumulation would be more robust.
        var = jnp.maximum(ss * inv_n - mean * mean, 0.0)
        rstd = jax.lax.rsqrt(var + eps)
        scale = gamma_ref[...] * rstd
        bias = beta_ref[...] - mean * scale
        o_ref[...] = (xf_ref[0:n, :] * scale + bias).astype(o_ref.dtype)


def _stats_kernel(x_ref, sum_ref, sumsq_ref, *, n, tile_rows, tiles_per_chunk):
    """Two-pass path, pass 1: per-chunk partial per-feature sums, accumulated
    directly into the (8, d) output blocks with plain vreg adds."""
    p = pl.program_id(0)
    i = pl.program_id(1)

    @pl.when(i == 0)
    def _init():
        sum_ref[...] = jnp.zeros_like(sum_ref)
        sumsq_ref[...] = jnp.zeros_like(sumsq_ref)

    xb = x_ref[...].astype(jnp.float32)
    row0 = (p * tiles_per_chunk + i) * tile_rows
    rows = jax.lax.broadcasted_iota(jnp.int32, xb.shape, 0) + row0
    # Masks both the ragged final tile and any duplicate (index-clamped) tiles.
    xb = jnp.where(rows < n, xb, 0.0)

    folded = xb.reshape(tile_rows // 8, 8, xb.shape[-1])
    sum_ref[...] += jnp.sum(folded, axis=0)
    sumsq_ref[...] += jnp.sum(folded * folded, axis=0)


def _norm_kernel(sum_ref, sumsq_ref, gamma_ref, beta_ref, x_ref, o_ref,
                 *, n, eps):
    """Two-pass path, pass 2: chunk-reduce + scale/bias folded into the kernel
    prologue (a few vregs per step; recomputing every step keeps it megacore
    safe), then a single FMA over the row tile."""
    s = jnp.sum(sum_ref[...], axis=0, keepdims=True)
    ss = jnp.sum(sumsq_ref[...], axis=0, keepdims=True)
    inv_n = 1.0 / float(n)
    mean = s * inv_n
    var = jnp.maximum(ss * inv_n - mean * mean, 0.0)
    rstd = jax.lax.rsqrt(var + eps)
    scale = gamma_ref[...] * rstd
    bias = beta_ref[...] - mean * scale
    o_ref[...] = (x_ref[...].astype(jnp.float32) * scale
                  + bias).astype(o_ref.dtype)


# ---------------------------------------------------------------------------
# Wrapper
# ---------------------------------------------------------------------------
def seq_bn(x, gamma, beta, *, eps=1e-5, force_two_pass=False, block_bytes=None):
    """Pallas SeqBN forward.  x: (..., d_model); gamma/beta: (d_model,)."""
    d = x.shape[-1]
    assert gamma.shape == (d,) and beta.shape == (d,)
    flat = x.reshape(-1, d)
    n = flat.shape[0]
    out_dtype = x.dtype
    itemsize = jnp.dtype(out_dtype).itemsize

    gamma2 = gamma.astype(jnp.float32).reshape(1, d)
    beta2 = beta.astype(jnp.float32).reshape(1, d)

    phys_vmem = _vmem_capacity_bytes()
    big_vmem = phys_vmem >= 100 * 1024 * 1024       # v5e/v6e (128 MiB) vs v7x
    target_block = block_bytes or ((8 if big_vmem else 6) * 1024 * 1024)
    two_pass_vmem_limit = (64 if big_vmem else 48) * 1024 * 1024

    # ---- tiny-input fallback: whole array as one resident block ----------
    if n < 8:
        out = pl.pallas_call(
            functools.partial(_resident_kernel, n=n, eps=float(eps)),
            out_shape=jax.ShapeDtypeStruct((n, d), out_dtype),
        )(flat, gamma2, beta2)
        return out.reshape(x.shape)

    # ---- row tiles: as big as the VMEM budget allows, multiple of 8 rows --
    tile_rows = max(8, (target_block // (d * 4)) // 8 * 8)
    tile_rows = min(tile_rows, (n // 8) * 8)
    n_tiles = pl.cdiv(n, tile_rows)
    xf_rows = n_tiles * tile_rows

    # ---- fused single-call path if the working set fits in VMEM -----------
    fused_workset = (
        xf_rows * d * 4                      # resident f32 copy of x
        + n * d * itemsize                   # resident output block
        + xf_rows * d * 4                    # normalize-step f32 temporaries
        + 2 * tile_rows * d * itemsize       # streamed-input double buffer
        + tile_rows * d * 4                  # per-tile cast/mask temporaries
        + (2 << 20))                         # accumulators + headroom
    use_fused = (not force_two_pass) and fused_workset <= int(phys_vmem * 0.6)

    if use_fused:
        out = pl.pallas_call(
            functools.partial(_fused_kernel, n=n, tile_rows=tile_rows,
                              eps=float(eps)),
            out_shape=jax.ShapeDtypeStruct((n, d), out_dtype),
            grid_spec=pltpu.PrefetchScalarGridSpec(
                num_scalar_prefetch=0,
                grid=(n_tiles,),
                in_specs=[
                    pl.BlockSpec((tile_rows, d), lambda i: (i, 0)),
                    pl.BlockSpec((1, d), lambda i: (0, 0)),
                    pl.BlockSpec((1, d), lambda i: (0, 0)),
                ],
                out_specs=pl.BlockSpec((n, d), lambda i: (0, 0)),
                scratch_shapes=[
                    pltpu.VMEM((xf_rows, d), jnp.float32),
                    pltpu.VMEM((8, d), jnp.float32),
                    pltpu.VMEM((8, d), jnp.float32),
                ]),
            compiler_params=pltpu.CompilerParams(
                dimension_semantics=("arbitrary",),
                vmem_limit_bytes=min(int(fused_workset + (8 << 20)),
                                     int(phys_vmem * 0.9))),
        )(flat, gamma2, beta2)
        return out.reshape(x.shape)

    # ---- two-pass path (3 HBM passes) --------------------------------------
    chunks = _num_stats_chunks()
    if chunks > n_tiles:
        chunks = 1
    tpc = pl.cdiv(n_tiles, chunks)           # tiles per chunk

    sums, sumsqs = pl.pallas_call(
        functools.partial(_stats_kernel, n=n, tile_rows=tile_rows,
                          tiles_per_chunk=tpc),
        out_shape=(
            jax.ShapeDtypeStruct((chunks * 8, d), jnp.float32),
            jax.ShapeDtypeStruct((chunks * 8, d), jnp.float32),
        ),
        grid_spec=pltpu.PrefetchScalarGridSpec(
            num_scalar_prefetch=0,
            grid=(chunks, tpc),
            in_specs=[pl.BlockSpec(
                (tile_rows, d),
                lambda p, i: (jnp.minimum(p * tpc + i, n_tiles - 1), 0))],
            out_specs=[
                pl.BlockSpec((8, d), lambda p, i: (p, 0)),
                pl.BlockSpec((8, d), lambda p, i: (p, 0)),
            ]),
        compiler_params=pltpu.CompilerParams(
            dimension_semantics=("parallel", "arbitrary"),
            vmem_limit_bytes=two_pass_vmem_limit),
    )(flat)

    out = pl.pallas_call(
        functools.partial(_norm_kernel, n=n, eps=float(eps)),
        out_shape=jax.ShapeDtypeStruct((n, d), out_dtype),
        grid_spec=pltpu.PrefetchScalarGridSpec(
            num_scalar_prefetch=0,
            grid=(n_tiles,),
            in_specs=[
                pl.BlockSpec((chunks * 8, d), lambda i: (0, 0)),
                pl.BlockSpec((chunks * 8, d), lambda i: (0, 0)),
                pl.BlockSpec((1, d), lambda i: (0, 0)),
                pl.BlockSpec((1, d), lambda i: (0, 0)),
                pl.BlockSpec((tile_rows, d), lambda i: (i, 0)),
            ],
            out_specs=pl.BlockSpec((tile_rows, d), lambda i: (i, 0))),
        compiler_params=pltpu.CompilerParams(
            dimension_semantics=("parallel",),
            vmem_limit_bytes=two_pass_vmem_limit),
    )(sums, sumsqs, gamma2, beta2, flat)
    # NOTE: if the caller never reuses x, input_output_aliases={4: 0} on the
    # normalize call would recycle x's HBM buffer; not done here because
    # `flat` aliases the caller's x.
    return out.reshape(x.shape)


# ---------------------------------------------------------------------------
# Reference + tests
# ---------------------------------------------------------------------------
def _reference_seq_bn(x, gamma, beta, eps=1e-5):
    d = x.shape[-1]
    flat = x.reshape(-1, d).astype(jnp.float32)
    mean = flat.mean(axis=0, keepdims=True)
    var = flat.var(axis=0, keepdims=True)            # biased, like BN training
    y = ((flat - mean) * jax.lax.rsqrt(var + eps)
         * gamma[None, :].astype(jnp.float32)
         + beta[None, :].astype(jnp.float32))
    return y.reshape(x.shape).astype(x.dtype)


def _check(name, y, y_ref, x):
    assert y.shape == x.shape and y.dtype == x.dtype, name
    assert jnp.allclose(y, y_ref, atol=1e-4, rtol=1e-4), name


if __name__ == "__main__":
    key = jax.random.PRNGKey(0)
    k1, k2, k3, k4, kg, kb = jax.random.split(key, 6)

    # Case 1: small (seq, batch, d_model) — fused streamed path, single tile.
    S, B, D = 8, 4, 32
    x = jax.random.normal(k1, (S, B, D), dtype=jnp.float32)
    gamma = 1.0 + 0.1 * jax.random.normal(kg, (D,), dtype=jnp.float32)
    beta = 0.1 * jax.random.normal(kb, (D,), dtype=jnp.float32)
    y = jax.block_until_ready(seq_bn(x, gamma, beta))
    _check("fused-single-tile", y, _reference_seq_bn(x, gamma, beta), x)

    # Case 2: odd sizes, forced two-pass with tiny blocks — exercises ragged
    # edge blocks, chunking, (8,d) accumulators and the fused scale/bias
    # prologue of the normalize kernel.
    S2, B2, D2 = 13, 5, 40
    x2 = jax.random.normal(k2, (S2, B2, D2), dtype=jnp.float32)
    g2 = jnp.ones((D2,), jnp.float32)
    b2 = jnp.zeros((D2,), jnp.float32)
    y2 = jax.block_until_ready(
        seq_bn(x2, g2, b2, force_two_pass=True, block_bytes=2048))
    _check("two-pass-ragged", y2, _reference_seq_bn(x2, g2, b2), x2)

    # Case 3: multi-tile fused path with a ragged final tile.
    S3, B3, D3 = 300, 1, 48
    x3 = jax.random.normal(k3, (S3, B3, D3), dtype=jnp.float32)
    g3 = 1.0 + 0.05 * jax.random.normal(kg, (D3,), dtype=jnp.float32)
    b3 = 0.05 * jax.random.normal(kb, (D3,), dtype=jnp.float32)
    y3 = jax.block_until_ready(seq_bn(x3, g3, b3, block_bytes=4096))
    _check("fused-multi-tile", y3, _reference_seq_bn(x3, g3, b3), x3)

    # Case 4: fewer than 8 rows — whole-array resident fallback.
    x4 = jax.random.normal(k4, (2, 3, 16), dtype=jnp.float32)
    g4 = jnp.ones((16,), jnp.float32)
    b4 = jnp.zeros((16,), jnp.float32)
    y4 = jax.block_until_ready(seq_bn(x4, g4, b4))
    _check("resident-tiny", y4, _reference_seq_bn(x4, g4, b4), x4)

    print("KERNEL_OK")
</pallas_src>

<mosaic_0001>
module attributes {stable_mosaic.version = 11 : i64} {
  func.func @_fused_kernel(%arg0: i32, %arg1: memref<32x32xf32, #tpu.memory_space<vmem>>, %arg2: memref<1x32xf32, #tpu.memory_space<vmem>>, %arg3: memref<1x32xf32, #tpu.memory_space<vmem>>, %arg4: memref<32x32xf32, #tpu.memory_space<vmem>>, %arg5: memref<32x32xf32, #tpu.memory_space<vmem>>, %arg6: memref<8x32xf32, #tpu.memory_space<vmem>>, %arg7: memref<8x32xf32, #tpu.memory_space<vmem>>) attributes {dimension_semantics = [#tpu.dimension_semantics<arbitrary>], iteration_bounds = array<i64: 1>, scalar_prefetch = 0 : i64, scratch_operands = 3 : i64, tpu.core_type = #tpu.core_type<tc>, window_params = [{transform_indices = @transform_0, window_bounds = array<i64: 32, 32>}, {pipeline_mode = #tpu.pipeline_mode<synchronous>, transform_indices = @transform_1, window_bounds = array<i64: 1, 32>}, {pipeline_mode = #tpu.pipeline_mode<synchronous>, transform_indices = @transform_2, window_bounds = array<i64: 1, 32>}, {pipeline_mode = #tpu.pipeline_mode<synchronous>, transform_indices = @transform_3, window_bounds = array<i64: 32, 32>}]} {
    %c0_i32 = arith.constant 0 : i32
    %0 = arith.cmpi eq, %arg0, %c0_i32 : i32
    %1 = arith.extui %0 : i1 to i32
    %c0_i32_0 = arith.constant 0 : i32
    %2 = arith.cmpi ne, %1, %c0_i32_0 : i32
    scf.if %2 {
      %cst_16 = arith.constant 0.000000e+00 : f32
      %28 = vector.broadcast %cst_16 : f32 to vector<8x32xf32>
      %c0_17 = arith.constant 0 : index
      %c0_18 = arith.constant 0 : index
      %29 = vector.load %arg6[%c0_17, %c0_18] : memref<8x32xf32, #tpu.memory_space<vmem>>, vector<8x32xf32>
      tpu.vector_store %arg6[%c0_17, %c0_18], %28 {strides = array<i32>} : memref<8x32xf32, #tpu.memory_space<vmem>>, vector<8x32xf32>,
      %cst_19 = arith.constant 0.000000e+00 : f32
      %30 = vector.broadcast %cst_19 : f32 to vector<8x32xf32>
      %c0_20 = arith.constant 0 : index
      %c0_21 = arith.constant 0 : index
      %31 = vector.load %arg7[%c0_20, %c0_21] : memref<8x32xf32, #tpu.memory_space<vmem>>, vector<8x32xf32>
      tpu.vector_store %arg7[%c0_20, %c0_21], %30 {strides = array<i32>} : memref<8x32xf32, #tpu.memory_space<vmem>>, vector<8x32xf32>,
    } else {
    }
    %c0 = arith.constant 0 : index
    %c0_1 = arith.constant 0 : index
    %3 = vector.load %arg1[%c0, %c0_1] : memref<32x32xf32, #tpu.memory_space<vmem>>, vector<32x32xf32>
    %c32_i32 = arith.constant 32 : i32
    %4 = arith.muli %arg0, %c32_i32 : i32
    %5 = tpu.iota {dimensions = array<i32: 0>} : vector<32x32xi32>
    %6 = vector.broadcast %4 : i32 to vector<32x32xi32>
    %7 = arith.addi %5, %6 : vector<32x32xi32>
    %c32_i32_2 = arith.constant 32 : i32
    %8 = vector.broadcast %c32_i32_2 : i32 to vector<32x32xi32>
    %9 = arith.cmpi slt, %7, %8 : vector<32x32xi32>
    %cst = arith.constant 0.000000e+00 : f32
    %10 = vector.broadcast %cst : f32 to vector<32x32xf32>
    %11 = arith.select %9, %3, %10 : vector<32x32xi1>, vector<32x32xf32>
    %12 = tpu.assume_multiple %4, 8 : i32
    %13 = arith.index_cast %12 : i32 to index
    %c0_3 = arith.constant 0 : index
    %14 = vector.load %arg5[%13, %c0_3] : memref<32x32xf32, #tpu.memory_space<vmem>>, vector<32x32xf32>
    tpu.vector_store %arg5[%13, %c0_3], %11 {strides = array<i32>} : memref<32x32xf32, #tpu.memory_space<vmem>>, vector<32x32xf32>,
    %15 = vector.shape_cast %11 : vector<32x32xf32> to vector<4x8x32xf32>
    %c0_4 = arith.constant 0 : index
    %c0_5 = arith.constant 0 : index
    %16 = vector.load %arg6[%c0_4, %c0_5] : memref<8x32xf32, #tpu.memory_space<vmem>>, vector<8x32xf32>
    %cst_6 = arith.constant dense<0.000000e+00> : vector<8x32xf32>
    %17 = vector.multi_reduction <add>, %15, %cst_6 [0] : vector<4x8x32xf32> to vector<8x32xf32>
    %18 = arith.addf %16, %17 : vector<8x32xf32>
    %c0_7 = arith.constant 0 : index
    %c0_8 = arith.constant 0 : index
    %19 = vector.load %arg6[%c0_7, %c0_8] : memref<8x32xf32, #tpu.memory_space<vmem>>, vector<8x32xf32>
    tpu.vector_store %arg6[%c0_7, %c0_8], %18 {strides = array<i32>} : memref<8x32xf32, #tpu.memory_space<vmem>>, vector<8x32xf32>,
    %c0_9 = arith.constant 0 : index
    %c0_10 = arith.constant 0 : index
    %20 = vector.load %arg7[%c0_9, %c0_10] : memref<8x32xf32, #tpu.memory_space<vmem>>, vector<8x32xf32>
    %21 = arith.mulf %15, %15 : vector<4x8x32xf32>
    %cst_11 = arith.constant dense<0.000000e+00> : vector<8x32xf32>
    %22 = vector.multi_reduction <add>, %21, %cst_11 [0] : vector<4x8x32xf32> to vector<8x32xf32>
    %23 = arith.addf %20, %22 : vector<8x32xf32>
    %c0_12 = arith.constant 0 : index
    %c0_13 = arith.constant 0 : index
    %24 = vector.load %arg7[%c0_12, %c0_13] : memref<8x32xf32, #tpu.memory_space<vmem>>, vector<8x32xf32>
    tpu.vector_store %arg7[%c0_12, %c0_13], %23 {strides = array<i32>} : memref<8x32xf32, #tpu.memory_space<vmem>>, vector<8x32xf32>,
    %c0_i32_14 = arith.constant 0 : i32
    %25 = arith.cmpi eq, %arg0, %c0_i32_14 : i32
    %26 = arith.extui %25 : i1 to i32
    %c0_i32_15 = arith.constant 0 : i32
    %27 = arith.cmpi ne, %26, %c0_i32_15 : i32
    scf.if %27 {
      %c0_16 = arith.constant 0 : index
      %c0_17 = arith.constant 0 : index
      %28 = vector.load %arg6[%c0_16, %c0_17] : memref<8x32xf32, #tpu.memory_space<vmem>>, vector<8x32xf32>
      %cst_18 = arith.constant dense<0.000000e+00> : vector<32xf32>
      %29 = vector.multi_reduction <add>, %28, %cst_18 [0] : vector<8x32xf32> to vector<32xf32>
      %30 = vector.shape_cast %29 : vector<32xf32> to vector<1x32xf32>
      %c0_19 = arith.constant 0 : index
      %c0_20 = arith.constant 0 : index
      %31 = vector.load %arg7[%c0_19, %c0_20] : memref<8x32xf32, #tpu.memory_space<vmem>>, vector<8x32xf32>
      %cst_21 = arith.constant dense<0.000000e+00> : vector<32xf32>
      %32 = vector.multi_reduction <add>, %31, %cst_21 [0] : vector<8x32xf32> to vector<32xf32>
      %33 = vector.shape_cast %32 : vector<32xf32> to vector<1x32xf32>
      %cst_22 = arith.constant 3.125000e-02 : f32
      %34 = vector.broadcast %cst_22 : f32 to vector<1x32xf32>
      %35 = arith.mulf %30, %34 : vector<1x32xf32>
      %cst_23 = arith.constant 3.125000e-02 : f32
      %36 = vector.broadcast %cst_23 : f32 to vector<1x32xf32>
      %37 = arith.mulf %33, %36 : vector<1x32xf32>
      %38 = arith.mulf %35, %35 : vector<1x32xf32>
      %39 = arith.subf %37, %38 : vector<1x32xf32>
      %cst_24 = arith.constant 0.000000e+00 : f32
      %40 = vector.broadcast %cst_24 : f32 to vector<1x32xf32>
      %41 = arith.maximumf %39, %40 : vector<1x32xf32>
      %cst_25 = arith.constant 9.99999974E-6 : f32
      %42 = vector.broadcast %cst_25 : f32 to vector<1x32xf32>
      %43 = arith.addf %41, %42 : vector<1x32xf32>
      %44 = math.rsqrt %43 : vector<1x32xf32>
      %c0_26 = arith.constant 0 : index
      %c0_27 = arith.constant 0 : index
      %45 = vector.load %arg2[%c0_26, %c0_27] : memref<1x32xf32, #tpu.memory_space<vmem>>, vector<1x32xf32>
      %46 = arith.mulf %45, %44 : vector<1x32xf32>
      %c0_28 = arith.constant 0 : index
      %c0_29 = arith.constant 0 : index
      %47 = vector.load %arg3[%c0_28, %c0_29] : memref<1x32xf32, #tpu.memory_space<vmem>>, vector<1x32xf32>
      %48 = arith.mulf %35, %46 : vector<1x32xf32>
      %49 = arith.subf %47, %48 : vector<1x32xf32>
      %c0_30 = arith.constant 0 : index
      %c0_31 = arith.constant 0 : index
      %50 = vector.load %arg5[%c0_30, %c0_31] : memref<32x32xf32, #tpu.memory_space<vmem>>, vector<32x32xf32>
      %51 = vector.broadcast %46 : vector<1x32xf32> to vector<32x32xf32>
      %52 = arith.mulf %50, %51 : vector<32x32xf32>
      %53 = vector.broadcast %49 : vector<1x32xf32> to vector<32x32xf32>
      %54 = arith.addf %52, %53 : vector<32x32xf32>
      %c0_32 = arith.constant 0 : index
      %c0_33 = arith.constant 0 : index
      %55 = vector.load %arg4[%c0_32, %c0_33] : memref<32x32xf32, #tpu.memory_space<vmem>>, vector<32x32xf32>
      tpu.vector_store %arg4[%c0_32, %c0_33], %54 {strides = array<i32>} : memref<32x32xf32, #tpu.memory_space<vmem>>, vector<32x32xf32>,
    } else {
    }
    return
  }
  func.func @transform_0(%arg0: i32) -> (i32, i32) {
    %c0_i32 = arith.constant 0 : i32
    %c0_i32_0 = arith.constant 0 : i32
    return %arg0, %c0_i32 : i32, i32
  }
  func.func @transform_1(%arg0: i32) -> (i32, i32) {
    %c0_i32 = arith.constant 0 : i32
    %c0_i32_0 = arith.constant 0 : i32
    %c0_i32_1 = arith.constant 0 : i32
    return %c0_i32, %c0_i32_0 : i32, i32
  }
  func.func @transform_2(%arg0: i32) -> (i32, i32) {
    %c0_i32 = arith.constant 0 : i32
    %c0_i32_0 = arith.constant 0 : i32
    %c0_i32_1 = arith.constant 0 : i32
    return %c0_i32, %c0_i32_0 : i32, i32
  }
  func.func @transform_3(%arg0: i32) -> (i32, i32) {
    %c0_i32 = arith.constant 0 : i32
    %c0_i32_0 = arith.constant 0 : i32
    %c0_i32_1 = arith.constant 0 : i32
    return %c0_i32, %c0_i32_0 : i32, i32
  }
}

</mosaic_0001>

<bundles_post_ra>
// kernel: tpu_custom_call.1
= control target key start
LH: loop header
LB: loop body
LE: loop exit
PB: predicated region body
PF: predicated region fallthrough
CT: control target
= control target key end

     0   :  { %8 = vsyncpa [#allocation6], 0  ;;  %s303_s0 = inlined_call_operand.hbm [shape: f32[32,32], index: 0, kind: input, shape index: {}]   ;;  %s304_s1 = inlined_call_operand.vmem [shape: f32[1,32], index: 1, kind: input, shape index: {}]   ;;  %s305_s2 = inlined_call_operand.vmem [shape: f32[1,32], index: 2, kind: input, shape index: {}]   ;;  %s306_s3 = inlined_call_operand.hbm [shape: f32[32,32], index: 3, kind: output, shape index: {}]  }
   0x1   :  { %9 = vsyncpa [#allocation7], 0  ;;  %s220_s12 = smov [#allocation5]   ;;  %s172_s16 = scalar_lea.hbm %s303_s0, 512 }
   0x2   :  { %s15_s13 = sshll.u32 %s220_s12, 4  ;;  %p173_p0 = scmp.ne.s32.totalorder %s303_s0, %s172_s16  ;;  %s16_s13 = int_to_ptr.vmem [resolvable:$true] %s15_s13 }
   0x3   :  { %p176_p1 = scmp.lt.u32.totalorder %s172_s16, %s303_s0 }
   0x5   :  { %p178_p2 = pnand %p176_p1, %p173_p0 }
   0x7   :  { %181 = shalt.err (!%p178_p2)
}
   0x8   :  { %s182_s21 = scalar_lea.vmem %s16_s13, 512  ;;  %p187_p4 = scmp.lt.s32.totalorder %s16_s13, %s16_s13 }
   0x9   :  { %p183_p3 = scmp.ne.s32.totalorder %s16_s13, %s182_s21  ;;  %p188_p5 = scmp.lt.s32.totalorder %s182_s21, %s182_s21 }
   0xb   :  { %p189_p6 = por %p188_p5, %p187_p4 }
   0xd   :  { %p190_p7 = pnand %p189_p6, %p183_p3 }
   0xf   :  { %193 = shalt.err (!%p190_p7)
}
  0x10   :  { %s221_s22 = smov 128   ;;  %s222_s23 = smov 8  }
  0x11   :  { %21 = dma.hbm_to_vmem [thread:$0]  %s303_s0, 512, %s16_s13, [#allocation6], %s221_s22, %s221_s22, %s222_s23  }
  0x12   :  { %216 = dma.done.wait [#allocation6], 512  }
  0x13   :  { %217 = vsyncadd [#allocation6], 4294966784  ;;  %vm33_vm0 = vcmask 261120   ;;  %v223_v0 = vmov 0.0   ;;  %v36_v1 = vld [vmem:[#allocation5] sm:$0xff]  ;;  %v37_v2 = vld [vmem:[#allocation5 + $0x8] sm:$0xff]  ;;  %v125_v49 = vlaneseq }
  0x14   :  { %34 = vst.msk [vmem:[#allocation3] sm:$0xff] %vm33_vm0, %v223_v0  ;;  %35 = vst.msk [vmem:[#allocation4] sm:$0xff] %vm33_vm0, %v223_v0  ;;  %v38_v3 = vld [vmem:[#allocation5 + $0x10] sm:$0xff]  ;;  %v39_v4 = vld [vmem:[#allocation5 + $0x18] sm:$0xff]  ;;  %v66_v5 = vsel %vm33_vm0, %v36_v1, 0.0  ;;  %v67_v6 = vsel %vm33_vm0, %v37_v2, 0.0  ;;  %v76_v8 = vmul.f32 %v36_v1, %v36_v1  ;;  %v77_v10 = vmul.f32 %v37_v2, %v37_v2 }
  0x15   :  { %v69_v7 = vsel %vm33_vm0, %v38_v3, 0.0  ;;  %61 = vst.msk [vmem:[#allocation2] sm:$0xff] %vm33_vm0, %v36_v1  ;;  %62 = vst.msk [vmem:[#allocation2 + $0x8] sm:$0xff] %vm33_vm0, %v37_v2  ;;  %v68_v9 = vadd.f32 %v67_v6, %v66_v5  ;;  %v78_v11 = vmul.f32 %v38_v3, %v38_v3  ;;  %v71_v12 = vsel %vm33_vm0, %v39_v4, 0.0  ;;  %v115_v51 = vld [vmem:[%s304_s1] sm:$0x1] }
  0x16   :  { %63 = vst.msk [vmem:[#allocation2 + $0x10] sm:$0xff] %vm33_vm0, %v38_v3  ;;  %64 = vst.msk [vmem:[#allocation2 + $0x18] sm:$0xff] %vm33_vm0, %v39_v4  ;;  %v79_v13 = vmul.f32 %v39_v4, %v39_v4  ;;  %v80_v14 = vsel %vm33_vm0, %v76_v8, 0.0  ;;  %v81_v16 = vsel %vm33_vm0, %v77_v10, 0.0  ;;  %v126_v50 = vshrl.u32 %v125_v49, 7  ;;  %s224_s29 = smov [#allocation8]  }
  0x17   :  { %v70_v15 = vadd.f32 %v69_v7, %v68_v9  ;;  %v83_v17 = vsel %vm33_vm0, %v78_v11, 0.0  ;;  %v82_v19 = vadd.f32 %v81_v16, %v80_v14  ;;  %v117_v55 = vld [vmem:[%s305_s2] sm:$0x1]  ;;  %s153_s30 = sshll.u32 %s224_s29, 4  ;;  %s154_s30 = int_to_ptr.vmem [resolvable:$true] %s153_s30 }
  0x18   :  { %v85_v21 = vsel %vm33_vm0, %v79_v13, 0.0  ;;  %v127_v52 = vsub.s32 0, %v126_v50  ;;  %s194_s1 = scalar_lea.vmem %s154_s30, 512  ;;  %p199_p9 = scmp.lt.s32.totalorder %s154_s30, %s154_s30 }
  0x19   :  { %v72_v20 = vadd.f32 %v71_v12, %v70_v15  ;;  %v84_v22 = vadd.f32 %v83_v17, %v82_v19  ;;  %p195_p8 = scmp.ne.s32.totalorder %s154_s30, %s194_s1  ;;  %p200_p10 = scmp.lt.s32.totalorder %s194_s1, %s194_s1 }
  0x1b   :  { %v65_v18 = vld [vmem:[#allocation3] sm:$0xff]  ;;  %v75_v24 = vld [vmem:[#allocation4] sm:$0xff]  ;;  %v86_v25 = vadd.f32 %v85_v21, %v84_v22  ;;  %p201_p11 = por %p200_p10, %p199_p9 }
  0x1c   :  { %v73_v23 = vadd.f32 %v72_v20, %v65_v18  ;;  %v120_v57 = vld [vmem:[#allocation2] sm:$0xff]  ;;  %v121_v59 = vld [vmem:[#allocation2 + $0x8] sm:$0xff] }
  0x1d   :  { %v87_v26 = vadd.f32 %v86_v25, %v75_v24  ;;  %v122_v60 = vld [vmem:[#allocation2 + $0x10] sm:$0xff]  ;;  %v123_v61 = vld [vmem:[#allocation2 + $0x18] sm:$0xff]  ;;  %p202_p12 = pnand %p201_p11, %p195_p8 }
  0x1e   :  { %74 = vst.msk [vmem:[#allocation3] sm:$0xff] %vm33_vm0, %v73_v23 }
  0x1f   :  { %88 = vst.msk [vmem:[#allocation4] sm:$0xff] %vm33_vm0, %v87_v26 }
  0x25   :  { %v92_v27 = vld [vmem:[#allocation3] sm:$0xff] }
  0x26   :  { %v93_v28 = vsel %vm33_vm0, %v92_v27, 0.0  ;;  %v100_v30 = vld [vmem:[#allocation4] sm:$0xff] }
  0x27   :  { %v94_v29 = vrot.slane %v93_v28, 4  ;;  %v101_v32 = vsel %vm33_vm0, %v100_v30, 0.0 }
  0x28   :  { %v102_v33 = vrot.slane %v101_v32, 4 }
  0x29   :  { %v95_v31 = vadd.f32 %v94_v29, %v93_v28 }
  0x2a   :  { %v103_v35 = vadd.f32 %v102_v33, %v101_v32 }
  0x2b   :  { %v96_v34 = vrot.slane %v95_v31, 2 }
  0x2c   :  { %v104_v37 = vrot.slane %v103_v35, 2 }
  0x2d   :  { %v97_v36 = vadd.f32 %v96_v34, %v95_v31 }
  0x2e   :  { %v105_v39 = vadd.f32 %v104_v37, %v103_v35 }
  0x2f   :  { %v98_v38 = vrot.slane %v97_v36, 1 }
  0x30   :  { %v106_v41 = vrot.slane %v105_v39, 1 }
  0x31   :  { %v99_v40 = vadd.f32 %v98_v38, %v97_v36 }
  0x32   :  { %v107_v43 = vadd.f32 %v106_v41, %v105_v39 }
  0x33   :  { %v108_v42 = vmul.f32 0.03125, %v99_v40 }
  0x34   :  { %v109_v45 = vmul.f32 0.03125, %v107_v43 }
  0x35   :  { %v110_v44 = vmul.f32 %v108_v42, %v108_v42 }
  0x37   :  { %v111_v46 = vsub.f32 %v109_v45, %v110_v44 }
  0x39   :  { %v112_v47 = vmax.f32 %v111_v46, 0.0 }
  0x3b   :  { %v113_v48 = vadd.f32 1e-05, %v112_v47 }
  0x3d   :  { %170 = vrsqrt.f32 %v113_v48 }
  0x47   :  { %v171_v53 = vpop.eup %170 }
  0x48   :  { %v116_v54 = vmul.f32 %v171_v53, %v115_v51 }
  0x4a   :  { %v118_v56 = vmul.f32 %v116_v54, %v108_v42  ;;  %v128_v58 = vrot.slane %v116_v54, %v127_v52 }
  0x4c   :  { %v119_v62 = vsub.f32 %v117_v55, %v118_v56  ;;  %v130_v63 = vmul.f32 %v128_v58, %v120_v57  ;;  %v131_v1 = vmul.f32 %v128_v58, %v121_v59  ;;  %v132_v2 = vmul.f32 %v128_v58, %v122_v60 }
  0x4d   :  { %v133_v3 = vmul.f32 %v128_v58, %v123_v61 }
  0x4e   :  { %v138_v0 = vrot.slane %v119_v62, %v127_v52 }
  0x50   :  { %v140_v4 = vadd.f32 %v138_v0, %v130_v63  ;;  %v141_v5 = vadd.f32 %v138_v0, %v131_v1  ;;  %v142_v6 = vadd.f32 %v138_v0, %v132_v2  ;;  %v143_v7 = vadd.f32 %v138_v0, %v133_v3 }
  0x52   :  { %144 = vst.msk [vmem:[#allocation8] sm:$0xff] %vm33_vm0, %v140_v4  ;;  %145 = vst.msk [vmem:[#allocation8 + $0x8] sm:$0xff] %vm33_vm0, %v141_v5 }
  0x53   :  { %146 = vst.msk [vmem:[#allocation8 + $0x10] sm:$0xff] %vm33_vm0, %v142_v6  ;;  %147 = vst.msk [vmem:[#allocation8 + $0x18] sm:$0xff] %vm33_vm0, %v143_v7 }
  0x54   :  { %205 = shalt.err (!%p202_p12)
}
  0x55   :  { %s206_s5 = scalar_lea.hbm %s306_s3, 512 }
  0x56   :  { %p207_p13 = scmp.ne.s32.totalorder %s306_s3, %s206_s5  ;;  %p210_p0 = scmp.lt.u32.totalorder %s206_s5, %s306_s3 }
  0x58   :  { %p212_p1 = pnand %p210_p0, %p207_p13 }
  0x5a   :  { %215 = shalt.err (!%p212_p1)
}
  0x5b   :  { %159 = dma.vmem_to_hbm [thread:$0]  %s154_s30, 512, %s306_s3, [#allocation7], %s221_s22, %s221_s22, %s222_s23  }
  0x5c   :  { %218 = dma.done.wait [#allocation7], 512  }
  0x5d   :  { %219 = vsyncadd [#allocation7], 4294966784 }
  0x5e   :  { %163 = vsyncpa [#allocation6], 1 }
  0x5f   :  { %164 = vsyncpa [#allocation7], 1 }

</bundles_post_ra>
